<compile_context>
chip_gen: v5e
topology: v5e:2x2
jax: 0.10.0
libtpu: 0.0.40
codegen_flags: <defaults>
</compile_context>

<pallas_src>
import math

import jax
import jax.numpy as jnp
from jax.experimental import pallas as pl
from jax.experimental.pallas import tpu as pltpu


def _disc_loss_kernel(gt_ref, synth_ref, out_ref, acc_ref):
    # gt_ref / synth_ref: (b_tile, tile_f) VMEM tiles
    # out_ref:            (1, tile_f), resident across the B grid axis
    # acc_ref:            (1, tile_f) f32 scratch accumulator
    b = pl.program_id(1)

    @pl.when(b == 0)
    def _init():
        acc_ref[...] = jnp.zeros_like(acc_ref)

    gt = gt_ref[...].astype(jnp.float32)
    synth = synth_ref[...].astype(jnp.float32)
    loss = jnp.maximum(synth + 1.0, 0.0) + jnp.maximum(1.0 - gt, 0.0)
    acc_ref[...] += jnp.sum(loss, axis=0, keepdims=True)

    @pl.when(b == pl.num_programs(1) - 1)
    def _finalize():
        out_ref[...] = acc_ref[...].astype(out_ref.dtype)


def _round_up(x, m):
    return ((x + m - 1) // m) * m


def discriminator_loss(
    score_gt,
    score_synth,
    *,
    max_tile_f=4096,
    max_b_tile=128,
    vmem_budget_bytes=8 * 1024 * 1024,
):
    """score_gt, score_synth: (B, C, H, W). Returns (C, H, W) = hinge-loss sum over B."""
    assert score_gt.shape == score_synth.shape
    assert score_gt.dtype == score_synth.dtype

    B = score_gt.shape[0]
    feat_shape = score_gt.shape[1:]
    F = int(math.prod(feat_shape)) if feat_shape else 1

    gt2d = score_gt.reshape(B, F)
    synth2d = score_synth.reshape(B, F)

    # --- Batch tiling: bound per-step VMEM footprint for large B. -----------
    if B > max_b_tile:
        b_tile = max_b_tile  # multiple of 8 by construction (128)
        B_pad = _round_up(B, b_tile)
        if B_pad != B:
            # Padded rows contribute exactly zero loss:
            #   max(0, 1 + (-1)) + max(0, 1 - (+1)) == 0
            gt2d = jnp.pad(gt2d, ((0, B_pad - B), (0, 0)), constant_values=1.0)
            synth2d = jnp.pad(
                synth2d, ((0, B_pad - B), (0, 0)), constant_values=-1.0
            )
    else:
        b_tile = B
        B_pad = B

    # --- Lane tile selection: big, 128-aligned, within a portable VMEM budget.
    itemsize = jnp.dtype(score_gt.dtype).itemsize
    # 2 inputs x 2 pipeline buffers + output x 2 buffers + f32 accumulator,
    # per lane column.
    per_col = 2 * 2 * b_tile * itemsize + 2 * itemsize + 4
    tile_f = min(max_tile_f, _round_up(F, 128))
    while tile_f > 128 and tile_f * per_col > vmem_budget_bytes:
        tile_f -= 128
    # Keep at least 2 steps along the parallel F axis when possible so the
    # grid can be split across both TensorCores (v7x megacore).
    if pl.cdiv(F, tile_f) < 2 and F >= 256:
        tile_f = max(128, ((F // 2) // 128) * 128)

    F_pad = _round_up(F, tile_f)
    if F_pad != F:
        # Padded columns are sliced off below; their values are irrelevant.
        gt2d = jnp.pad(gt2d, ((0, 0), (0, F_pad - F)))
        synth2d = jnp.pad(synth2d, ((0, 0), (0, F_pad - F)))

    grid = (F_pad // tile_f, B_pad // b_tile)

    out = pl.pallas_call(
        _disc_loss_kernel,
        out_shape=jax.ShapeDtypeStruct((1, F_pad), score_gt.dtype),
        grid_spec=pltpu.PrefetchScalarGridSpec(
            num_scalar_prefetch=0,
            grid=grid,
            in_specs=[
                pl.BlockSpec((b_tile, tile_f), lambda j, b: (b, j)),
                pl.BlockSpec((b_tile, tile_f), lambda j, b: (b, j)),
            ],
            out_specs=pl.BlockSpec((1, tile_f), lambda j, b: (0, j)),
            scratch_shapes=[pltpu.VMEM((1, tile_f), jnp.float32)],
        ),
        compiler_params=pltpu.CompilerParams(
            dimension_semantics=("parallel", "arbitrary"),
            vmem_limit_bytes=32 * 1024 * 1024,
        ),
    )(gt2d, synth2d)

    return out[0, :F].reshape(feat_shape)


def _reference(score_gt, score_synth):
    one = jnp.ones_like(score_gt)
    zero = jnp.zeros_like(score_gt)
    loss = jnp.maximum(zero, one + score_synth) + jnp.maximum(zero, one - score_gt)
    return loss.sum(axis=0)


if __name__ == "__main__":
    key = jax.random.PRNGKey(0)

    # Case 1: canonical small NCHW shapes (F = 1024, multiple of 128).
    k1, k2, k3, k4, k5, k6 = jax.random.split(key, 6)
    B, C, H, W = 2, 4, 16, 16
    score_gt = jax.random.normal(k1, (B, C, H, W), dtype=jnp.float32)
    score_synth = jax.random.normal(k2, (B, C, H, W), dtype=jnp.float32)
    out = jax.block_until_ready(discriminator_loss(score_gt, score_synth))
    ref = _reference(score_gt, score_synth)
    assert out.shape == ref.shape, (out.shape, ref.shape)
    assert jnp.allclose(out, ref, atol=1e-5, rtol=1e-5)

    # Case 2: non-128-multiple feature size (exercises F padding path).
    gt2 = jax.random.normal(k3, (3, 3, 5, 7), dtype=jnp.float32)
    sy2 = jax.random.normal(k4, (3, 3, 5, 7), dtype=jnp.float32)
    out2 = jax.block_until_ready(discriminator_loss(gt2, sy2))
    ref2 = _reference(gt2, sy2)
    assert out2.shape == ref2.shape, (out2.shape, ref2.shape)
    assert jnp.allclose(out2, ref2, atol=1e-5, rtol=1e-5)

    # Case 3: batch larger than the batch tile (exercises B accumulator path).
    gt3 = jax.random.normal(k5, (10, 4, 16, 16), dtype=jnp.float32)
    sy3 = jax.random.normal(k6, (10, 4, 16, 16), dtype=jnp.float32)
    out3 = jax.block_until_ready(discriminator_loss(gt3, sy3, max_b_tile=8))
    ref3 = _reference(gt3, sy3)
    assert out3.shape == ref3.shape, (out3.shape, ref3.shape)
    assert jnp.allclose(out3, ref3, atol=1e-5, rtol=1e-5)

    print("KERNEL_OK")
</pallas_src>

<mosaic_0001>
module attributes {stable_mosaic.version = 11 : i64} {
  func.func @_disc_loss_kernel(%arg0: i32, %arg1: i32, %arg2: memref<2x512xf32, #tpu.memory_space<vmem>>, %arg3: memref<2x512xf32, #tpu.memory_space<vmem>>, %arg4: memref<1x512xf32, #tpu.memory_space<vmem>>, %arg5: memref<1x512xf32, #tpu.memory_space<vmem>>) attributes {dimension_semantics = [#tpu.dimension_semantics<parallel>, #tpu.dimension_semantics<arbitrary>], iteration_bounds = array<i64: 2, 1>, scalar_prefetch = 0 : i64, scratch_operands = 1 : i64, tpu.core_type = #tpu.core_type<tc>, window_params = [{transform_indices = @transform_0, window_bounds = array<i64: 2, 512>}, {transform_indices = @transform_1, window_bounds = array<i64: 2, 512>}, {transform_indices = @transform_2, window_bounds = array<i64: 1, 512>}]} {
    %c0_i32 = arith.constant 0 : i32
    %0 = arith.cmpi eq, %arg1, %c0_i32 : i32
    %1 = arith.extui %0 : i1 to i32
    %c0_i32_0 = arith.constant 0 : i32
    %2 = arith.cmpi ne, %1, %c0_i32_0 : i32
    scf.if %2 {
      %cst_14 = arith.constant 0.000000e+00 : f32
      %22 = vector.broadcast %cst_14 : f32 to vector<1x512xf32>
      %c0_15 = arith.constant 0 : index
      %c0_16 = arith.constant 0 : index
      %23 = vector.load %arg5[%c0_15, %c0_16] : memref<1x512xf32, #tpu.memory_space<vmem>>, vector<1x512xf32>
      tpu.vector_store %arg5[%c0_15, %c0_16], %22 {strides = array<i32>} : memref<1x512xf32, #tpu.memory_space<vmem>>, vector<1x512xf32>,
    } else {
    }
    %c0 = arith.constant 0 : index
    %c0_1 = arith.constant 0 : index
    %3 = vector.load %arg2[%c0, %c0_1] : memref<2x512xf32, #tpu.memory_space<vmem>>, vector<2x512xf32>
    %c0_2 = arith.constant 0 : index
    %c0_3 = arith.constant 0 : index
    %4 = vector.load %arg3[%c0_2, %c0_3] : memref<2x512xf32, #tpu.memory_space<vmem>>, vector<2x512xf32>
    %cst = arith.constant 1.000000e+00 : f32
    %5 = vector.broadcast %cst : f32 to vector<2x512xf32>
    %6 = arith.addf %4, %5 : vector<2x512xf32>
    %cst_4 = arith.constant 0.000000e+00 : f32
    %7 = vector.broadcast %cst_4 : f32 to vector<2x512xf32>
    %8 = arith.maximumf %6, %7 : vector<2x512xf32>
    %cst_5 = arith.constant 1.000000e+00 : f32
    %9 = vector.broadcast %cst_5 : f32 to vector<2x512xf32>
    %10 = arith.subf %9, %3 : vector<2x512xf32>
    %cst_6 = arith.constant 0.000000e+00 : f32
    %11 = vector.broadcast %cst_6 : f32 to vector<2x512xf32>
    %12 = arith.maximumf %10, %11 : vector<2x512xf32>
    %13 = arith.addf %8, %12 : vector<2x512xf32>
    %c0_7 = arith.constant 0 : index
    %c0_8 = arith.constant 0 : index
    %14 = vector.load %arg5[%c0_7, %c0_8] : memref<1x512xf32, #tpu.memory_space<vmem>>, vector<1x512xf32>
    %cst_9 = arith.constant dense<0.000000e+00> : vector<512xf32>
    %15 = vector.multi_reduction <add>, %13, %cst_9 [0] : vector<2x512xf32> to vector<512xf32>
    %16 = vector.shape_cast %15 : vector<512xf32> to vector<1x512xf32>
    %17 = arith.addf %14, %16 : vector<1x512xf32>
    %c0_10 = arith.constant 0 : index
    %c0_11 = arith.constant 0 : index
    %18 = vector.load %arg5[%c0_10, %c0_11] : memref<1x512xf32, #tpu.memory_space<vmem>>, vector<1x512xf32>
    tpu.vector_store %arg5[%c0_10, %c0_11], %17 {strides = array<i32>} : memref<1x512xf32, #tpu.memory_space<vmem>>, vector<1x512xf32>,
    %c0_i32_12 = arith.constant 0 : i32
    %19 = arith.cmpi eq, %arg1, %c0_i32_12 : i32
    %20 = arith.extui %19 : i1 to i32
    %c0_i32_13 = arith.constant 0 : i32
    %21 = arith.cmpi ne, %20, %c0_i32_13 : i32
    scf.if %21 {
      %c0_14 = arith.constant 0 : index
      %c0_15 = arith.constant 0 : index
      %22 = vector.load %arg5[%c0_14, %c0_15] : memref<1x512xf32, #tpu.memory_space<vmem>>, vector<1x512xf32>
      %c0_16 = arith.constant 0 : index
      %c0_17 = arith.constant 0 : index
      %23 = vector.load %arg4[%c0_16, %c0_17] : memref<1x512xf32, #tpu.memory_space<vmem>>, vector<1x512xf32>
      tpu.vector_store %arg4[%c0_16, %c0_17], %22 {strides = array<i32>} : memref<1x512xf32, #tpu.memory_space<vmem>>, vector<1x512xf32>,
    } else {
    }
    return
  }
  func.func @transform_0(%arg0: i32, %arg1: i32) -> (i32, i32) {
    %c0_i32 = arith.constant 0 : i32
    return %arg1, %arg0 : i32, i32
  }
  func.func @transform_1(%arg0: i32, %arg1: i32) -> (i32, i32) {
    %c0_i32 = arith.constant 0 : i32
    return %arg1, %arg0 : i32, i32
  }
  func.func @transform_2(%arg0: i32, %arg1: i32) -> (i32, i32) {
    %c0_i32 = arith.constant 0 : i32
    %c0_i32_0 = arith.constant 0 : i32
    return %c0_i32, %arg0 : i32, i32
  }
}

</mosaic_0001>

<bundles_post_ra>
// kernel: tpu_custom_call.1
= control target key start
LH: loop header
LB: loop body
LE: loop exit
PB: predicated region body
PF: predicated region fallthrough
CT: control target
= control target key end

     0   :  { %7 = vsyncpa [#allocation4], 0  ;;  %s824_s0 = inlined_call_operand.hbm [shape: f32[2,1024], index: 0, kind: input, shape index: {}]   ;;  %s825_s1 = inlined_call_operand.hbm [shape: f32[2,1024], index: 1, kind: input, shape index: {}]   ;;  %s826_s2 = inlined_call_operand.hbm [shape: f32[1,1024], index: 2, kind: output, shape index: {}]  }
   0x1   :  { %9 = vsyncpa [#allocation4 + $0x1], 0 }
   0x2   :  { %10 = vsyncpa [#allocation7], 0 }
   0x3   :  { %12 = vsyncpa [#allocation7 + $0x1], 0 }
   0x4   :  { %13 = vsyncpa [#allocation5], 0 }
   0x5   :  { %15 = vsyncpa [#allocation5 + $0x1], 0  ;;  %s680_s9 = smov 0   ;;  %s682_s10 = smov 0  }
   0x6   :  { %s684_s11 = smov 0   ;;  %s686_s12 = smov 0  }
   0x7   :  { %s688_s13 = smov 0   ;;  %s690_s14 = smov 0  }
   0x8 LB: > { %s428_s15 = sadd.s32 4294967295, %s662_s14   ;;  %s429_s16 = sadd.s32 4294967294, %s662_s14   ;;  %s662_s14 = sphi %s690_s14, %s21_s14   ;;  %s658_s13 = sphi %s688_s13, %s837_s13   ;;  %s654_s12 = sphi %s686_s12, %s836_s12   ;;  %s650_s11 = sphi %s684_s11, %s835_s11   ;;  %s646_s10 = sphi %s682_s10, %s834_s10   ;;  %s642_s9 = sphi %s680_s9, %s833_s9  }
   0x9   : > { %s33_s17 = sadd.s32 1, %s658_s13  ;;  %s42_s18 = sadd.s32 1, %s650_s11 }
   0xa   : > { %p35_p0 = scmp.ge.s32.totalorder %s33_s17, 2  ;;  %p49_p1 = scmp.ne.s32.totalorder %s650_s11, %s646_s10 }
   0xb   : > { %p50_p2 = scmp.eq.s32.totalorder %s662_s14, 0  ;;  %p55_p3 = scmp.ne.s32.totalorder %s646_s10, %s642_s9 }
   0xc   : > { %s839_s17 = smov (%p35_p0, %s33_s17), 0  ;;  %p56_p5 = scmp.eq.s32.totalorder %s428_s15, 0 }
   0xd   : > { %p721_p4 = por %p50_p2, %p49_p1  ;;  %s38_s20 = ssub.s32 %s658_s13, %s839_s17 }
   0xe   : > { %p107_p6 = scmp.eq.s32.totalorder %s428_s15, 1  ;;  %p40_p7 = scmp.eq.s32.totalorder %s38_s20, 0 }
   0xf   : > { %p727_p8 = por %p56_p5, %p55_p3  ;;  %p113_p10 = scmp.eq.s32.totalorder %s429_s16, 1 }
  0x10   : > { %p731_p9 = por %p107_p6, %p49_p1  ;;  %p431_p12 = scmp.ge.s32.totalorder %s662_s14, 2 }
  0x11   : > { %s736_s23 = scalar_select %p40_p7, %s650_s11, %s42_s18  }
  0x12   : > { %p738_p11 = por %p113_p10, %p55_p3  ;;  %p465_p13 = scmp.lt.s32.totalorder %s662_s14, 2 }
  0x13   : > { %s133_s25 = sand.u32 1, %s650_s11   ;;  %s446_s27 = sshll.u32 %s658_s13, 3 }
  0x14   : > { %s432_s26 = sshll.u32 %s133_s25, 3  ;;  %s144_s30 = scalar_lea.hbm %s824_s0, %s446_s27 }
  0x15   : > { %s137_s3 = scalar_lea.vmem [#allocation3], %s432_s26  ;;  %s146_s5 = sshll.u32 %s144_s30, 4  ;;  %s147_s5 = int_to_ptr.hbm [resolvable:$true] %s146_s5 }
  0x16   : > { %s148_s4 = sshll.u32 %s137_s3, 4  ;;  %p455_p0 = pnand %p465_p13, %p721_p4  ;;  %s149_s4 = int_to_ptr.vmem [resolvable:$true] %s148_s4 }
  0x17   : > { %p438_p1 = scmp.ge.s32.totalorder %s662_s14, 1  ;;  %p175_p2 = scmp.lt.s32.totalorder %s662_s14, 3 }
  0x18   : > { %s134_s6 = scalar_lea.sflag [#allocation4], %s133_s25  ;;  %s166_s15 = scalar_lea.hbm %s825_s1, %s446_s27 }
  0x19   : > { %457 = dma.hbm_to_vmem [thread:$0]  (!%p455_p0), %s147_s5, 128, %s149_s4, %s134_s6  }
  0x1a   : > { %p176_p3 = pnand %p438_p1, %p175_p2  ;;  %s159_s16 = scalar_lea.vmem [#allocation6], %s432_s26 }
  0x1b   : > { %s170_s18 = sshll.u32 %s159_s16, 4  ;;  %s168_s20 = sshll.u32 %s166_s15, 4  ;;  %s171_s18 = int_to_ptr.vmem [resolvable:$true] %s170_s18  ;;  %s169_s20 = int_to_ptr.hbm [resolvable:$true] %s168_s20 }
  0x1c   : > { %s156_s28 = scalar_lea.sflag [#allocation7], %s133_s25  ;;  %179 = sbr.rel (%p176_p3) target bundleno = 82 (0x52), region = 28 }
  0x1d   : > { %460 = dma.hbm_to_vmem [thread:$0]  (!%p455_p0), %s169_s20, 128, %s171_s18, %s156_s28  }
  0x1e   : > { %s757_s19 = sand.u32 (!%p176_p3), 1, %s646_s10  }
  0x1f   : > { %s439_s29 = sshll.u32 (!%p176_p3), %s757_s19, 3  ;;  %s182_s30 = scalar_lea.sflag (!%p176_p3), [#allocation4], %s757_s19 }
  0x20   : > { %s185_s3 = scalar_lea.vmem (!%p176_p3), [#allocation3], %s439_s29 }
  0x21   : > { %629 = dma.done.wait (%p727_p8), %s182_s30, 128  }
  0x22   : > { %631 = vsyncadd (%p727_p8), %s182_s30, 4294967168  ;;  %s192_s26 = scalar_lea.sflag [#allocation7], %s757_s19  ;;  %s195_s25 = scalar_lea.vmem [#allocation6], %s439_s29 }
  0x23   : > { %633 = dma.done.wait (%p727_p8), %s192_s26, 128  }
  0x24   : > { %635 = vsyncadd (%p727_p8), %s192_s26, 4294967168  ;;  %v229_v0 = vlaneseq  ;;  %v664_v2 = vmov 0.0   ;;  %v234_v3 = vld [vmem:[%s185_s3] sm:$0xff]  ;;  %v235_v4 = vld [vmem:[%s195_s25] sm:$0xff]  ;;  %vm252_vm1 = vcmask 1041408   ;;  %vm288_vm2 = vcmask 1040384  }
  0x25   : > { %v236_v5 = vadd.f32 1.0, %v235_v4  ;;  %v238_v6 = vsub.f32 1.0, %v234_v3  ;;  %vm290_vm3 = vcmask 1042434   ;;  %s441_s21 = sshll.u32 %s757_s19, 2  ;;  %s443_s27 = sshll.u32 %s654_s12, 2 }
  0x26   : > { %vm770_vm0 = vcmp.lt.s32.totalorder %v229_v0, 512  ;;  %s316_s6 = scalar_lea.hbm %s826_s2, %s443_s27  ;;  %s221_s7 = scalar_lea.vmem [#allocation8], %s441_s21 }
  0x27   : > { %233 = vst.msk [vmem:[#allocation2] sm:$0xf] %vm770_vm0, %v664_v2  ;;  %v237_v7 = vmax.f32 %v236_v5, 0.0  ;;  %v239_v8 = vmax.f32 %v238_v6, 0.0  ;;  %s318_s8 = sshll.u32 %s221_s7, 4  ;;  %s320_s15 = sshll.u32 %s316_s6, 4  ;;  %s319_s8 = int_to_ptr.vmem [resolvable:$true] %s318_s8  ;;  %s321_s15 = int_to_ptr.hbm [resolvable:$true] %s320_s15 }
  0x28   : > { %s306_s16 = scalar_lea.sflag [#allocation5], %s757_s19  ;;  %s590_s12 = sshra.s32 %s321_s15, 4  ;;  %s591_s12 = int_to_ptr.hbm [resolvable:$true] %s590_s12 }
  0x29   : > { %v240_v9 = vadd.f32 %v239_v8, %v237_v7  ;;  %s592_s18 = scalar_lea.hbm %s591_s12, 4  ;;  %s596_s29 = scalar_lea.hbm %s826_s2, 8 }
  0x2a   : > { %p593_p4 = scmp.ne.s32.totalorder %s591_s12, %s592_s18  ;;  %p597_p7 = scmp.lt.s32.totalorder %s591_s12, %s826_s2 }
  0x2b   : > { %243 = vst [vmem:[#allocation1] ss:$4 sm:$0xff] %v240_v9  ;;  %p598_p8 = scmp.lt.s32.totalorder %s596_s29, %s592_s18 }
  0x2c   : > { %p594_p5 = pnand %p593_p4, %p731_p9 }
  0x2d   : > { %p599_p10 = por %p598_p8, %p597_p7 }
  0x2e   : > { %v241_v45 = vld [vmem:[#allocation2] sm:$0xf]  ;;  %p595_p6 = pneg %p594_p5 }
  0x30   : > { %p600_p13 = pnand %p599_p10, %p595_p6 }
  0x32   : > { %v244_v10 = vld.sshfl [vmem:[#allocation1] sm:$0xff pattern:$0x73625140]  ;;  %v245_v11 = vld.sshfl [vmem:[#allocation1 + $0x8] sm:$0xff pattern:$0x73625140] }
  0x33   : > { %v246_v12 = vld.sshfl [vmem:[#allocation1 + $0x10] sm:$0xff pattern:$0x73625140]  ;;  %v247_v13 = vld.sshfl [vmem:[#allocation1 + $0x18] sm:$0xff pattern:$0x73625140] }
  0x34   : > { %v253_v14 = vsel %vm252_vm1, %v244_v10, 0.0  ;;  %v260_v15 = vsel %vm252_vm1, %v245_v11, 0.0  ;;  %v267_v16 = vsel %vm252_vm1, %v246_v12, 0.0  ;;  %v274_v17 = vsel %vm252_vm1, %v247_v13, 0.0 }
  0x35   : > { %v254_v18 = vrot.slane %v253_v14, 4  ;;  %v261_v19 = vrot.slane %v260_v15, 4  ;;  %v268_v20 = vrot.slane %v267_v16, 4  ;;  %v275_v21 = vrot.slane %v274_v17, 4 }
  0x37   : > { %v255_v22 = vadd.f32 %v254_v18, %v253_v14  ;;  %v262_v23 = vadd.f32 %v261_v19, %v260_v15  ;;  %v269_v24 = vadd.f32 %v268_v20, %v267_v16  ;;  %v276_v25 = vadd.f32 %v275_v21, %v274_v17 }
  0x39   : > { %v256_v26 = vrot.slane %v255_v22, 2  ;;  %v263_v27 = vrot.slane %v262_v23, 2  ;;  %v270_v28 = vrot.slane %v269_v24, 2  ;;  %v277_v29 = vrot.slane %v276_v25, 2 }
  0x3b   : > { %v257_v30 = vadd.f32 %v256_v26, %v255_v22  ;;  %v264_v31 = vadd.f32 %v263_v27, %v262_v23  ;;  %v271_v32 = vadd.f32 %v270_v28, %v269_v24  ;;  %v278_v33 = vadd.f32 %v277_v29, %v276_v25 }
  0x3d   : > { %v258_v34 = vrot.slane %v257_v30, 1  ;;  %v265_v35 = vrot.slane %v264_v31, 1  ;;  %v272_v36 = vrot.slane %v271_v32, 1  ;;  %v279_v37 = vrot.slane %v278_v33, 1 }
  0x3f   : > { %v266_v38 = vadd.f32 %v265_v35, %v264_v31  ;;  %v273_v39 = vadd.f32 %v272_v36, %v271_v32  ;;  %v280_v40 = vadd.f32 %v279_v37, %v278_v33  ;;  %v259_v41 = vadd.f32 %v258_v34, %v257_v30 }
  0x41   : > { %v285_v42 = vrot.slane %v266_v38, 7  ;;  %v286_v43 = vrot.slane %v273_v39, 6  ;;  %v287_v44 = vrot.slane %v280_v40, 5 }
  0x43   : > { %v289_v46 = vsel %vm288_vm2, %v259_v41, %v285_v42  ;;  %v291_v47 = vsel %vm290_vm3, %v286_v43, %v287_v44 }
  0x44   : > { %v292_v48 = vsel %vm252_vm1, %v289_v46, %v291_v47 }
  0x45   : > { %v294_v49 = vadd.f32 %v292_v48, %v241_v45 }
  0x47   : > { %299 = vst.msk [vmem:[#allocation2] sm:$0xf] %vm770_vm0, %v294_v49 }
  0x4e   : > { %v303_v50 = vld [vmem:[#allocation2] sm:$0xf] }
  0x4f   : > { %304 = vst.msk [vmem:[%s221_s7] sm:$0xf] %vm770_vm0, %v303_v50 }
  0x50   : > { %603 = shalt.err (!%p600_p13)
}
  0x51   : > { %452 = dma.vmem_to_hbm [thread:$0]  (%p731_p9), %s319_s8, 64, %s321_s15, %s306_s16  }
  0x52 PF: > { %s332_s19 = sand.u32 1, %s642_s9   ;;  %p462_p0 = pnand %p431_p12, %p738_p11 }
  0x53   : > { %s333_s26 = scalar_lea.sflag [#allocation5], %s332_s19 }
  0x54   : > { %p463_p1 = pneg %p462_p0 }
  0x56   : > { %637 = dma.done.wait (%p463_p1), %s333_s26, 64  }
  0x57   : > { %639 = vsyncadd (%p463_p1), %s333_s26, 4294967232  ;;  %s21_s14 = sadd.s32 1, %s662_s14   ;;  %s833_s9 = smov %s646_s10 }
  0x58   : > { %p18_p2 = scmp.ge.s32.totalorder %s21_s14, 4   ;;  %s834_s10 = smov %s650_s11 }
  0x59   : > { %s835_s11 = smov %s736_s23  ;;  %s836_s12 = smov %s658_s13 }
  0x5a   : > { %s837_s13 = smov %s839_s17  ;;  %20 = sbr.rel (!%p18_p2) target bundleno = 8 (0x8), region = 94 }
  0x5f   :  { %339 = vsyncpa [#allocation4], 1 }
  0x60   :  { %341 = vsyncpa [#allocation4 + $0x1], 1 }
  0x61   :  { %342 = vsyncpa [#allocation7], 1 }
  0x62   :  { %344 = vsyncpa [#allocation7 + $0x1], 1 }
  0x63   :  { %345 = vsyncpa [#allocation5], 1 }
  0x64   :  { %347 = vsyncpa [#allocation5 + $0x1], 1 }

</bundles_post_ra>
